<compile_context>
chip_gen: v7x
topology: tpu7x:2x2x1
jax: 0.10.0
libtpu: 0.0.40
codegen_flags: <defaults>
</compile_context>

<pallas_src>
import jax
import jax.numpy as jnp
from jax.experimental import pallas as pl
from jax.experimental.pallas import tpu as pltpu

HIDDEN = 20
IN_FEATURES = 5
OUT_FEATURES = 8
SUBLANES = 8  # pad batch to a multiple of this


def _lstm_cell_zero_state(x, w_ref, b_ref):
    """One PyTorch LSTMCell with zero initial (h, c), fused live gates.

    w_ref: (in, 3H) columns packed as [i | g | o] (forget gate removed).
    b_ref: (1, 3H)  = (b_ih + b_hh) for the same three gates.
    Returns h = sigmoid(o_gate) * tanh(sigmoid(i_gate) * tanh(g_gate)).
    """
    h = HIDDEN
    # One MXU dot produces all three gates in the lane dimension (3H = 60 <= 128).
    z = jnp.dot(x, w_ref[...], preferred_element_type=jnp.float32) + b_ref[...]
    i = jax.nn.sigmoid(z[:, 0:h])
    g = jnp.tanh(z[:, h:2 * h])
    o = jax.nn.sigmoid(z[:, 2 * h:3 * h])
    c = i * g                       # exact: c0 == 0 so f-gate contributes nothing
    return o * jnp.tanh(c)


def lstm_service_kernel(x_ref, w1_ref, b1_ref, w2_ref, b2_ref,
                        wl_ref, bl_ref, out_ref):
    x = x_ref[...]
    h1 = _lstm_cell_zero_state(x, w1_ref, b1_ref)    # lstm1
    h2 = _lstm_cell_zero_state(h1, w2_ref, b2_ref)   # lstm2
    h3 = _lstm_cell_zero_state(h2, w2_ref, b2_ref)   # lstm2 again (as in forward)
    out = jnp.dot(h3, wl_ref[...], preferred_element_type=jnp.float32) + bl_ref[...]
    out_ref[...] = out.astype(out_ref.dtype)


def init_params(key, hidden=HIDDEN):
    """Deterministic init mimicking PyTorch's U(-1/sqrt(H), 1/sqrt(H)).

    LSTMCell weights are generated in the torch (4H, in) layout with gate
    order [i, f, g, o], then the forget gate is dropped and the remaining
    gates fused into one (in, 3H) matrix (and (1, 3H) bias) per cell.
    """
    k = 1.0 / jnp.sqrt(jnp.float32(hidden))
    keys = jax.random.split(key, 10)

    def u(kk, shape):
        return jax.random.uniform(kk, shape, jnp.float32, minval=-k, maxval=k)

    live_gates = jnp.array([0, 2, 3])  # [i, g, o]; forget gate (1) is dead (c0 == 0)

    def make_cell(kw, kbi, kbh, in_dim):
        w_ih = u(kw, (4 * hidden, in_dim))               # torch layout (4H, in)
        b_ih = u(kbi, (4 * hidden,))
        b_hh = u(kbh, (4 * hidden,))
        # (4H, in) -> (4, H, in) -> keep [i,g,o] -> (3, H, in) -> (in, 3H)
        w4 = w_ih.reshape(4, hidden, in_dim)[live_gates]          # (3, H, in)
        w = jnp.transpose(w4, (2, 0, 1)).reshape(in_dim, 3 * hidden)
        b4 = (b_ih + b_hh).reshape(4, hidden)[live_gates]         # (3, H)
        b = b4.reshape(1, 3 * hidden)
        return w, b

    w1, b1 = make_cell(keys[0], keys[1], keys[2], IN_FEATURES)
    w2, b2 = make_cell(keys[3], keys[4], keys[5], hidden)
    w_lin = u(keys[6], (OUT_FEATURES, hidden))           # torch layout (8, H)
    b_lin = u(keys[7], (OUT_FEATURES,))
    wl = w_lin.T                                          # (H, 8)
    bl = b_lin.reshape(1, OUT_FEATURES)
    return (w1, b1, w2, b2, wl, bl)


def lstm_service_forward(y, params):
    """y: (seq, batch, 5) float32 -> (batch, 8) float32."""
    if y.ndim != 3:
        y = y[None, ...]        # mirrors the np.expand_dims branch in forward()
    x = y[0].astype(jnp.float32)
    batch = x.shape[0]
    w1, b1, w2, b2, wl, bl = params

    # Pad batch up to a multiple of 8 sublanes so the vreg height is fully used;
    # zero rows are harmless and sliced off afterwards.
    padded_batch = -(-batch // SUBLANES) * SUBLANES
    if padded_batch != batch:
        x = jnp.pad(x, ((0, padded_batch - batch), (0, 0)))

    vmem = pl.BlockSpec(memory_space=pltpu.MemorySpace.VMEM)
    out = pl.pallas_call(
        lstm_service_kernel,
        out_shape=jax.ShapeDtypeStruct((padded_batch, OUT_FEATURES), jnp.float32),
        in_specs=[vmem] * 7,
        out_specs=vmem,
    )(x, w1, b1, w2, b2, wl, bl)
    return out[:batch]


def _reference_forward(y, params):
    """Pure-JAX reference of the same PyTorch semantics (for verification)."""
    x = y[0].astype(jnp.float32)
    w1, b1, w2, b2, wl, bl = params
    h = HIDDEN

    def cell(x, w, b):
        z = x @ w + b
        i = jax.nn.sigmoid(z[:, 0:h])
        g = jnp.tanh(z[:, h:2 * h])
        o = jax.nn.sigmoid(z[:, 2 * h:3 * h])
        return o * jnp.tanh(i * g)

    h1 = cell(x, w1, b1)
    h2 = cell(h1, w2, b2)
    h3 = cell(h2, w2, b2)
    return h3 @ wl + bl


if __name__ == "__main__":
    key = jax.random.PRNGKey(0)
    pkey, dkey = jax.random.split(key)

    params = init_params(pkey)

    seq, batch = 8, 4
    y = jax.random.normal(dkey, (seq, batch, IN_FEATURES), dtype=jnp.float32)

    out = lstm_service_forward(y, params)
    out = jax.block_until_ready(out)

    ref = _reference_forward(y, params)
    assert out.shape == (batch, OUT_FEATURES)
    assert jnp.allclose(out, ref, atol=1e-5, rtol=1e-5), "mismatch vs reference"

    print("KERNEL_OK")
</pallas_src>

<mosaic_0001>
module attributes {stable_mosaic.version = 11 : i64} {
  func.func @lstm_service_kernel(%arg0: memref<8x5xf32, #tpu.memory_space<vmem>>, %arg1: memref<5x60xf32, #tpu.memory_space<vmem>>, %arg2: memref<1x60xf32, #tpu.memory_space<vmem>>, %arg3: memref<20x60xf32, #tpu.memory_space<vmem>>, %arg4: memref<1x60xf32, #tpu.memory_space<vmem>>, %arg5: memref<20x8xf32, #tpu.memory_space<vmem>>, %arg6: memref<1x8xf32, #tpu.memory_space<vmem>>, %arg7: memref<8x8xf32, #tpu.memory_space<vmem>>) attributes {dimension_semantics = [], scalar_prefetch = 0 : i64, scratch_operands = 0 : i64, tpu.core_type = #tpu.core_type<tc>} {
    %c0 = arith.constant 0 : index
    %c0_0 = arith.constant 0 : index
    %0 = vector.load %arg0[%c0, %c0_0] : memref<8x5xf32, #tpu.memory_space<vmem>>, vector<8x5xf32>
    %c0_1 = arith.constant 0 : index
    %c0_2 = arith.constant 0 : index
    %1 = vector.load %arg1[%c0_1, %c0_2] : memref<5x60xf32, #tpu.memory_space<vmem>>, vector<5x60xf32>
    %cst = arith.constant dense<0.000000e+00> : vector<8x60xf32>
    %2 = tpu.matmul %0, %1, %cst {dimension_numbers = #tpu.dot_dimension_numbers<[1], [0], [0], [1], [0, 0, 1, 1], [], []>} : vector<8x5xf32>, vector<5x60xf32>, vector<8x60xf32> -> vector<8x60xf32>
    %c0_3 = arith.constant 0 : index
    %c0_4 = arith.constant 0 : index
    %3 = vector.load %arg2[%c0_3, %c0_4] : memref<1x60xf32, #tpu.memory_space<vmem>>, vector<1x60xf32>
    %4 = vector.broadcast %3 : vector<1x60xf32> to vector<8x60xf32>
    %5 = arith.addf %2, %4 : vector<8x60xf32>
    %6 = vector.extract_strided_slice %5 {offsets = [0, 0], sizes = [8, 20], strides = [1, 1]} : vector<8x60xf32> to vector<8x20xf32>
    %7 = arith.negf %6 : vector<8x20xf32>
    %8 = math.exp %7 : vector<8x20xf32>
    %cst_5 = arith.constant 1.000000e+00 : f32
    %9 = vector.broadcast %cst_5 : f32 to vector<8x20xf32>
    %10 = arith.addf %9, %8 : vector<8x20xf32>
    %11 = arith.divf %9, %10 : vector<8x20xf32>
    %12 = vector.extract_strided_slice %5 {offsets = [0, 20], sizes = [8, 20], strides = [1, 1]} : vector<8x60xf32> to vector<8x20xf32>
    %13 = math.tanh %12 : vector<8x20xf32>
    %14 = vector.extract_strided_slice %5 {offsets = [0, 40], sizes = [8, 20], strides = [1, 1]} : vector<8x60xf32> to vector<8x20xf32>
    %15 = arith.negf %14 : vector<8x20xf32>
    %16 = math.exp %15 : vector<8x20xf32>
    %cst_6 = arith.constant 1.000000e+00 : f32
    %17 = vector.broadcast %cst_6 : f32 to vector<8x20xf32>
    %18 = arith.addf %17, %16 : vector<8x20xf32>
    %19 = arith.divf %17, %18 : vector<8x20xf32>
    %20 = arith.mulf %11, %13 : vector<8x20xf32>
    %21 = math.tanh %20 : vector<8x20xf32>
    %22 = arith.mulf %19, %21 : vector<8x20xf32>
    %c0_7 = arith.constant 0 : index
    %c0_8 = arith.constant 0 : index
    %23 = vector.load %arg3[%c0_7, %c0_8] : memref<20x60xf32, #tpu.memory_space<vmem>>, vector<20x60xf32>
    %cst_9 = arith.constant dense<0.000000e+00> : vector<8x60xf32>
    %24 = tpu.matmul %22, %23, %cst_9 {dimension_numbers = #tpu.dot_dimension_numbers<[1], [0], [0], [1], [0, 0, 1, 1], [], []>} : vector<8x20xf32>, vector<20x60xf32>, vector<8x60xf32> -> vector<8x60xf32>
    %c0_10 = arith.constant 0 : index
    %c0_11 = arith.constant 0 : index
    %25 = vector.load %arg4[%c0_10, %c0_11] : memref<1x60xf32, #tpu.memory_space<vmem>>, vector<1x60xf32>
    %26 = vector.broadcast %25 : vector<1x60xf32> to vector<8x60xf32>
    %27 = arith.addf %24, %26 : vector<8x60xf32>
    %28 = vector.extract_strided_slice %27 {offsets = [0, 0], sizes = [8, 20], strides = [1, 1]} : vector<8x60xf32> to vector<8x20xf32>
    %29 = arith.negf %28 : vector<8x20xf32>
    %30 = math.exp %29 : vector<8x20xf32>
    %cst_12 = arith.constant 1.000000e+00 : f32
    %31 = vector.broadcast %cst_12 : f32 to vector<8x20xf32>
    %32 = arith.addf %31, %30 : vector<8x20xf32>
    %33 = arith.divf %31, %32 : vector<8x20xf32>
    %34 = vector.extract_strided_slice %27 {offsets = [0, 20], sizes = [8, 20], strides = [1, 1]} : vector<8x60xf32> to vector<8x20xf32>
    %35 = math.tanh %34 : vector<8x20xf32>
    %36 = vector.extract_strided_slice %27 {offsets = [0, 40], sizes = [8, 20], strides = [1, 1]} : vector<8x60xf32> to vector<8x20xf32>
    %37 = arith.negf %36 : vector<8x20xf32>
    %38 = math.exp %37 : vector<8x20xf32>
    %cst_13 = arith.constant 1.000000e+00 : f32
    %39 = vector.broadcast %cst_13 : f32 to vector<8x20xf32>
    %40 = arith.addf %39, %38 : vector<8x20xf32>
    %41 = arith.divf %39, %40 : vector<8x20xf32>
    %42 = arith.mulf %33, %35 : vector<8x20xf32>
    %43 = math.tanh %42 : vector<8x20xf32>
    %44 = arith.mulf %41, %43 : vector<8x20xf32>
    %c0_14 = arith.constant 0 : index
    %c0_15 = arith.constant 0 : index
    %45 = vector.load %arg3[%c0_14, %c0_15] : memref<20x60xf32, #tpu.memory_space<vmem>>, vector<20x60xf32>
    %cst_16 = arith.constant dense<0.000000e+00> : vector<8x60xf32>
    %46 = tpu.matmul %44, %45, %cst_16 {dimension_numbers = #tpu.dot_dimension_numbers<[1], [0], [0], [1], [0, 0, 1, 1], [], []>} : vector<8x20xf32>, vector<20x60xf32>, vector<8x60xf32> -> vector<8x60xf32>
    %c0_17 = arith.constant 0 : index
    %c0_18 = arith.constant 0 : index
    %47 = vector.load %arg4[%c0_17, %c0_18] : memref<1x60xf32, #tpu.memory_space<vmem>>, vector<1x60xf32>
    %48 = vector.broadcast %47 : vector<1x60xf32> to vector<8x60xf32>
    %49 = arith.addf %46, %48 : vector<8x60xf32>
    %50 = vector.extract_strided_slice %49 {offsets = [0, 0], sizes = [8, 20], strides = [1, 1]} : vector<8x60xf32> to vector<8x20xf32>
    %51 = arith.negf %50 : vector<8x20xf32>
    %52 = math.exp %51 : vector<8x20xf32>
    %cst_19 = arith.constant 1.000000e+00 : f32
    %53 = vector.broadcast %cst_19 : f32 to vector<8x20xf32>
    %54 = arith.addf %53, %52 : vector<8x20xf32>
    %55 = arith.divf %53, %54 : vector<8x20xf32>
    %56 = vector.extract_strided_slice %49 {offsets = [0, 20], sizes = [8, 20], strides = [1, 1]} : vector<8x60xf32> to vector<8x20xf32>
    %57 = math.tanh %56 : vector<8x20xf32>
    %58 = vector.extract_strided_slice %49 {offsets = [0, 40], sizes = [8, 20], strides = [1, 1]} : vector<8x60xf32> to vector<8x20xf32>
    %59 = arith.negf %58 : vector<8x20xf32>
    %60 = math.exp %59 : vector<8x20xf32>
    %cst_20 = arith.constant 1.000000e+00 : f32
    %61 = vector.broadcast %cst_20 : f32 to vector<8x20xf32>
    %62 = arith.addf %61, %60 : vector<8x20xf32>
    %63 = arith.divf %61, %62 : vector<8x20xf32>
    %64 = arith.mulf %55, %57 : vector<8x20xf32>
    %65 = math.tanh %64 : vector<8x20xf32>
    %66 = arith.mulf %63, %65 : vector<8x20xf32>
    %c0_21 = arith.constant 0 : index
    %c0_22 = arith.constant 0 : index
    %67 = vector.load %arg5[%c0_21, %c0_22] : memref<20x8xf32, #tpu.memory_space<vmem>>, vector<20x8xf32>
    %cst_23 = arith.constant dense<0.000000e+00> : vector<8x8xf32>
    %68 = tpu.matmul %66, %67, %cst_23 {dimension_numbers = #tpu.dot_dimension_numbers<[1], [0], [0], [1], [0, 0, 1, 1], [], []>} : vector<8x20xf32>, vector<20x8xf32>, vector<8x8xf32> -> vector<8x8xf32>
    %c0_24 = arith.constant 0 : index
    %c0_25 = arith.constant 0 : index
    %69 = vector.load %arg6[%c0_24, %c0_25] : memref<1x8xf32, #tpu.memory_space<vmem>>, vector<1x8xf32>
    %70 = vector.broadcast %69 : vector<1x8xf32> to vector<8x8xf32>
    %71 = arith.addf %68, %70 : vector<8x8xf32>
    %c0_26 = arith.constant 0 : index
    %c0_27 = arith.constant 0 : index
    %72 = vector.load %arg7[%c0_26, %c0_27] : memref<8x8xf32, #tpu.memory_space<vmem>>, vector<8x8xf32>
    tpu.vector_store %arg7[%c0_26, %c0_27], %71 {strides = array<i32>} : memref<8x8xf32, #tpu.memory_space<vmem>>, vector<8x8xf32>,
    return
  }
}

</mosaic_0001>

<bundles_post_ra>
// kernel: tpu_custom_call.1
= control target key start
LH: loop header
LB: loop body
LE: loop exit
PB: predicated region body
PF: predicated region fallthrough
CT: control target
= control target key end

     0   :  { %vm40_vm0 = vcmask 1044480   ;;  %v561_v2 = vmov 0.0   ;;  %vm562_vm1 = vmmov 0   ;;  %vm36_vm2 = vcmask 39936   ;;  %s680_s0 = inlined_call_operand.vmem [shape: f32[8,5], index: 0, kind: input, shape index: {}]   ;;  %s681_s1 = inlined_call_operand.vmem [shape: f32[5,60], index: 1, kind: input, shape index: {}]   ;;  %s682_s2 = inlined_call_operand.vmem [shape: f32[1,60], index: 2, kind: input, shape index: {}]   ;;  %s683_s3 = inlined_call_operand.vmem [shape: f32[20,60], index: 3, kind: input, shape index: {}]   ;;  %s684_s4 = inlined_call_operand.vmem [shape: f32[1,60], index: 4, kind: input, shape index: {}]   ;;  %s685_s5 = inlined_call_operand.vmem [shape: f32[20,8], index: 5, kind: input, shape index: {}]   ;;  %s686_s6 = inlined_call_operand.vmem [shape: f32[1,8], index: 6, kind: input, shape index: {}]   ;;  %s687_s7 = inlined_call_operand.hbm [shape: f32[8,8], index: 7, kind: output, shape index: {}]  }
   0x1   :  { %v28_v0 = vld [vmem:[%s681_s1] sm:$0x1f]  ;;  %465 = vmatprep.subr.mxu0 %v561_v2  ;;  %467 = vmatprep.mubr.msk.f32.mxu0 %vm562_vm1, %v561_v2 }
   0x2   :  { %v27_v1 = vld [vmem:[%s680_s0] sm:$0xff] }
   0x3   :  { %12 = vsyncpa [#allocation3], 0  ;;  %466 = vmatpush3.msk.msra.mxu0 %vm40_vm0, %v28_v0  ;;  %476 = vmatprep.mubr.msk.f32.mxu1 %vm562_vm1, %v561_v2  ;;  %v437_v3 = vld [vmem:[%s682_s2] ss:$0 sm:$0xff]  ;;  %s563_s0 = smov 108   ;;  %v133_v15 = vld [vmem:[%s683_s3 + $0x8] sm:$0xff] }
   0x4   :  { %468 = vmatmul.mubr.msk.f32.vlgmr.msra.gmra.mrb[0].mxu0 %vm36_vm2, %v27_v1  ;;  %v132_v14 = vld [vmem:[%s683_s3] sm:$0xff]  ;;  %v564_v16 = vmov 0.0|0.0   ;;  %v134_v18 = vld [vmem:[%s683_s3 + $0x10] sm:$0xf]  ;;  %vm148_vm3 = vcmask 1043456   ;;  %s565_s11 = smov 40  }
   0x5   :  { %485 = vmatprep.mubr.msk.f32.mxu0 %vm562_vm1, %v561_v2  ;;  %497 = vmatprep.subr.bf16.mxu1 %v564_v16  ;;  %v498_v17 = vpack.c.bf16 %v133_v15, %v132_v14  ;;  %s566_s12 = smov 88   ;;  %vm145_vm4 = vcmask 162816   ;;  %v441_v23 = vld [vmem:[%s684_s4] ss:$0 sm:$0xff]  ;;  %v334_v49 = vld [vmem:[%s685_s5 + $0x8] sm:$0xff]  ;;  %s567_s21 = smov [#allocation2]  }
   0x6   :  { %500 = vmatprep.subr.bf16.mxu0 %v564_v16  ;;  %v333_v48 = vld [vmem:[%s685_s5] sm:$0xff]  ;;  %v335_v51 = vld [vmem:[%s685_s5 + $0x10] sm:$0xf]  ;;  %s429_s22 = sshll.u32 %s567_s21, 4  ;;  %vm421_vm5 = vcmask 64512   ;;  %s430_s22 = int_to_ptr.vmem [resolvable:$true] %s429_s22 }
   0x7   :  { %499 = vmatpush3.bf16.msra.mxu1 %v498_v17  ;;  %502 = vmatpush3.bf16.msra.mxu0 %v498_v17  ;;  %v504_v50 = vpack.c.bf16 %v334_v49, %v333_v48  ;;  %v448_v56 = vld [vmem:[%s686_s6] ss:$0 sm:$0xff]  ;;  %s537_s5 = scalar_lea.vmem %s430_s22, 128  ;;  %p542_p1 = scmp.lt.s32.totalorder %s430_s22, %s430_s22 }
   0x8   :  { %474 = vmatprep.subr.mxu1 %v561_v2  ;;  %483 = vmatprep.subr.mxu0 %v561_v2  ;;  %p538_p0 = scmp.ne.s32.totalorder %s430_s22, %s537_s5  ;;  %p543_p2 = scmp.lt.s32.totalorder %s537_s5, %s537_s5 }
   0xa   :  { %p544_p3 = por %p543_p2, %p542_p1 }
   0xb   :  { %475 = vmatpush3.msk.msra.mxu1 %vm148_vm3, %v134_v18  ;;  %484 = vmatpush3.msk.msra.mxu0 %vm148_vm3, %v134_v18 }
   0xc   :  { %503 = vmatprep.subr.bf16.mxu1 %v564_v16  ;;  %p545_p4 = pnand %p544_p3, %p538_p0 }
  0xd7   :  { %v110_v4 = vpop.f32.mrb[0].mxu0 }
  0xd8   :  { %v111_v5 = vadd.f32 %v437_v3, %v110_v4  ;;  %v469_v6 = vpop.f32.mrb[1].mxu0 }
  0xda   :  { %513 = vtanh.f32 %v111_v5  ;;  %v440_v8 = vmul.f32 -1.442695, %v111_v5 }
  0xdc   :  { %515 = vpow2.f32 %v440_v8 }
  0xe4   :  { %v514_v7 = vpop.eup %513 }
  0xe5   :  { %122 = vrot.lane.b32.xlu0 %v514_v7, %s563_s0 }
  0xe6   :  { %v516_v9 = vpop.eup %515 }
  0xe7   :  { %v117_v10 = vadd.f32 1.0, %v516_v9 }
  0xe9   :  { %517 = vrcp.f32 %v117_v10 }
  0xf3   :  { %v518_v11 = vpop.eup %517 }
 0x157   :  { %v123_v12 = vpop.permute.xlu0 %122 }
 0x158   :  { %v125_v13 = vmul.f32 %v518_v11, %v123_v12 }
 0x15a   :  { %519 = vtanh.f32 %v125_v13 }
 0x164   :  { %v520_v19 = vpop.eup %519 }
 0x165   :  { %128 = vrot.lane.b32.xlu0 %v520_v19, %s565_s11 }
 0x1d7   :  { %v129_v20 = vpop.permute.xlu0 %128 }
 0x1d8   :  { %v131_v21 = vmul.f32 %v518_v11, %v129_v20 }
 0x1da   :  { %143 = vrot.lane.b32.xlu1 %v131_v21, %s566_s12 }
 0x24c   :  { %v144_v22 = vpop.permute.xlu1 %143 }
 0x24d   :  { %477 = vmatmul.mubr.msk.f32.vlgmr.msra.gmra.mrb[0].mxu1 %vm145_vm4, %v144_v22 }
 0x24e   :  { %494 = vmatprep.mubr.msk.f32.mxu1 %vm562_vm1, %v561_v2  ;;  %505 = vmatpush3.bf16.msra.mxu1 %v504_v50 }
 0x24f   :  { %492 = vmatprep.subr.mxu1 %v561_v2 }
 0x252   :  { %493 = vmatpush3.msk.msra.mxu1 %vm148_vm3, %v335_v51 }
 0x320   :  { %v218_v24 = vpop.f32.mrb[0].mxu1 }
 0x321   :  { %v219_v25 = vadd.f32 %v441_v23, %v218_v24  ;;  %v478_v26 = vpop.f32.mrb[1].mxu1 }
 0x323   :  { %521 = vtanh.f32 %v219_v25  ;;  %v444_v28 = vmul.f32 -1.442695, %v219_v25 }
 0x325   :  { %523 = vpow2.f32 %v444_v28 }
 0x32d   :  { %v522_v27 = vpop.eup %521 }
 0x32e   :  { %230 = vrot.lane.b32.xlu1 %v522_v27, %s563_s0 }
 0x32f   :  { %v524_v29 = vpop.eup %523 }
 0x330   :  { %v225_v30 = vadd.f32 1.0, %v524_v29 }
 0x332   :  { %525 = vrcp.f32 %v225_v30 }
 0x33c   :  { %v526_v31 = vpop.eup %525 }
 0x3a0   :  { %v231_v32 = vpop.permute.xlu1 %230 }
 0x3a1   :  { %v233_v33 = vmul.f32 %v526_v31, %v231_v32 }
 0x3a3   :  { %527 = vtanh.f32 %v233_v33 }
 0x3ad   :  { %v528_v34 = vpop.eup %527 }
 0x3ae   :  { %236 = vrot.lane.b32.xlu0 %v528_v34, %s565_s11 }
 0x420   :  { %v237_v35 = vpop.permute.xlu0 %236 }
 0x421   :  { %v239_v36 = vmul.f32 %v526_v31, %v237_v35 }
 0x423   :  { %241 = vrot.lane.b32.xlu1 %v239_v36, %s566_s12 }
 0x495   :  { %v242_v37 = vpop.permute.xlu1 %241 }
 0x496   :  { %486 = vmatmul.mubr.msk.f32.vlgmr.msra.gmra.mrb[2].mxu0 %vm145_vm4, %v242_v37 }
 0x569   :  { %v311_v38 = vpop.f32.mrb[2].mxu0 }
 0x56a   :  { %v312_v39 = vadd.f32 %v441_v23, %v311_v38  ;;  %v487_v40 = vpop.f32.mrb[3].mxu0 }
 0x56c   :  { %529 = vtanh.f32 %v312_v39  ;;  %v447_v42 = vmul.f32 -1.442695, %v312_v39 }
 0x56e   :  { %531 = vpow2.f32 %v447_v42 }
 0x576   :  { %v530_v41 = vpop.eup %529 }
 0x577   :  { %323 = vrot.lane.b32.xlu0 %v530_v41, %s563_s0 }
 0x578   :  { %v532_v43 = vpop.eup %531 }
 0x579   :  { %v318_v44 = vadd.f32 1.0, %v532_v43 }
 0x57b   :  { %533 = vrcp.f32 %v318_v44 }
 0x585   :  { %v534_v45 = vpop.eup %533 }
 0x5e9   :  { %v324_v46 = vpop.permute.xlu0 %323 }
 0x5ea   :  { %v326_v47 = vmul.f32 %v534_v45, %v324_v46 }
 0x5ec   :  { %535 = vtanh.f32 %v326_v47 }
 0x5f6   :  { %v536_v52 = vpop.eup %535 }
 0x5f7   :  { %329 = vrot.lane.b32.xlu1 %v536_v52, %s565_s11 }
 0x669   :  { %v330_v53 = vpop.permute.xlu1 %329 }
 0x66a   :  { %v332_v54 = vmul.f32 %v534_v45, %v330_v53 }
 0x66c   :  { %344 = vrot.lane.b32.xlu0 %v332_v54, %s566_s12 }
 0x6de   :  { %v345_v55 = vpop.permute.xlu0 %344 }
 0x6df   :  { %495 = vmatmul.mubr.msk.f32.vlgmr.msra.gmra.mrb[2].mxu1 %vm145_vm4, %v345_v55 }
 0x7b2   :  { %v417_v57 = vpop.f32.mrb[2].mxu1 }
 0x7b3   :  { %v418_v58 = vadd.f32 %v448_v56, %v417_v57  ;;  %v496_v59 = vpop.f32.mrb[3].mxu1 }
 0x7b5   :  { %422 = vst.msk [vmem:[#allocation2] sm:$0xff] %vm421_vm5, %v418_v58 }
 0x7b6   :  { %548 = shalt.err (!%p545_p4)
}
 0x7b7   :  { %s549_s25 = scalar_lea.hbm %s687_s7, 128 }
 0x7b8   :  { %p550_p5 = scmp.ne.s32.totalorder %s687_s7, %s549_s25  ;;  %p553_p6 = scmp.lt.u32.totalorder %s549_s25, %s687_s7 }
 0x7ba   :  { %p555_p7 = pnand %p553_p6, %p550_p5 }
 0x7bc   :  { %558 = shalt.err (!%p555_p7)
}
 0x7bd   :  { %432 = dma.vmem_to_hbm [thread:$0]  %s430_s22, 128, %s687_s7, [#allocation3]  }
 0x7be   :  { %559 = dma.done.wait [#allocation3], 128  }
 0x7bf   :  { %560 = vsyncadd [#allocation3], 4294967168 }
 0x7c0   :  { %436 = vsyncpa [#allocation3], 1 }

</bundles_post_ra>
